<compile_context>
chip_gen: v5e
topology: v5e:2x2
jax: 0.10.0
libtpu: 0.0.40
codegen_flags: <defaults>
</compile_context>

<pallas_src>
import functools

import jax
import jax.numpy as jnp
from jax.experimental import pallas as pl
from jax.experimental.pallas import tpu as pltpu


def _resnet_block_kernel(x_ref, wc_ref, bc_ref, wo_ref, bo_ref, o_ref, *, T, d):
    """Processes `nb` batch elements per grid step.

    x_ref : (nb, T + 2d, Cp)  reflect-padded input, compute dtype
    wc_ref: (3*Cp, Cp)        row-stacked dilated-conv taps
    bc_ref: (1, Cp)           conv bias (f32)
    wo_ref: (2*Cp, Cp)        vstack([W_shortcut, W_final_1x1])
    bo_ref: (1, Cp)           bs + b1 (f32)
    o_ref : (nb, T, Cp)
    """
    xp = x_ref[...]                                   # (nb, T+2d, Cp) compute dtype
    nb, _, Cp = xp.shape
    cdt = xp.dtype

    # LeakyReLU(0.2) on the whole reflect-padded tile (commutes with the reflect copy).
    # Elementwise math in f32 (v5e has no bf16 VPU path).
    xf = xp.astype(jnp.float32)
    h = jnp.where(xf > 0, xf, 0.2 * xf)               # (nb, T+2d, Cp) f32
    hc = h.astype(cdt)

    # Dilated k=3 conv as a single wide-K matmul: lane-stack the three shifted taps.
    taps = jnp.concatenate(
        [hc[:, 0:T], hc[:, d:T + d], hc[:, 2 * d:T + 2 * d]], axis=-1
    )                                                 # (nb, T, 3*Cp)
    taps2 = taps.reshape(nb * T, 3 * Cp)
    conv = jnp.dot(taps2, wc_ref[...],
                   preferred_element_type=jnp.float32) + bc_ref[...]   # (nb*T, Cp) f32

    h2 = jnp.where(conv > 0, conv, 0.2 * conv)        # LeakyReLU(0.2), f32

    # Fused shortcut (on x) + final 1x1 (on h2): one K=2*Cp matmul.
    x_in = xp[:, d:T + d].reshape(nb * T, Cp)         # interior slice == original x
    fused_in = jnp.concatenate([x_in, h2.astype(cdt)], axis=-1)         # (nb*T, 2*Cp)
    y = jnp.dot(fused_in, wo_ref[...],
                preferred_element_type=jnp.float32) + bo_ref[...]       # (nb*T, Cp) f32

    o_ref[...] = y.reshape(nb, T, Cp).astype(o_ref.dtype)


def _round_up(x, m):
    return ((x + m - 1) // m) * m


def resnet_block_forward_ntc(x_ntc, params, dilation=1,
                             compute_dtype=jnp.bfloat16, batch_block=1):
    """Channels-last entry point. x_ntc: (N, T, C). Returns (N, T, C)."""
    N, T, C = x_ntc.shape
    d = int(dilation)
    Cp = _round_up(C, 128)                            # lane-dense channel dim
    nb = int(batch_block)
    assert N % nb == 0, "batch_block must divide N"

    # Wrapper-side reflection pad along time + zero pad channels up to Cp.
    x_pad = jnp.pad(x_ntc, ((0, 0), (d, d), (0, 0)), mode="reflect")
    if Cp != C:
        x_pad = jnp.pad(x_pad, ((0, 0), (0, 0), (0, Cp - C)))
    x_pad = x_pad.astype(compute_dtype)

    w3, b3 = params["w3"], params["b3"]               # (C, C, 3), (C,)
    w1, b1 = params["w1"], params["b1"]               # (C, C, 1), (C,)
    ws, bs = params["ws"], params["bs"]               # (C, C, 1), (C,)

    # Fused dilated-conv weight: tap k occupies rows [k*Cp, k*Cp+C).
    wc = jnp.zeros((3 * Cp, Cp), jnp.float32)
    for k in range(3):
        wc = wc.at[k * Cp:k * Cp + C, :C].set(w3[:, :, k].T)
    bc = jnp.zeros((1, Cp), jnp.float32).at[0, :C].set(b3)

    # Fused shortcut + final 1x1 weight.
    wo = jnp.zeros((2 * Cp, Cp), jnp.float32)
    wo = wo.at[:C, :C].set(ws[:, :, 0].T)
    wo = wo.at[Cp:Cp + C, :C].set(w1[:, :, 0].T)
    bo = jnp.zeros((1, Cp), jnp.float32).at[0, :C].set(bs + b1)

    wc = wc.astype(compute_dtype)
    wo = wo.astype(compute_dtype)                     # biases stay f32

    # Explicit scoped-VMEM budget derived from the tile sizes (+ headroom).
    in_isz = jnp.dtype(compute_dtype).itemsize
    out_isz = jnp.dtype(x_ntc.dtype).itemsize
    in_tile = nb * (T + 2 * d) * Cp * in_isz
    out_tile = nb * T * Cp * out_isz
    weights = (5 * Cp * Cp) * in_isz + 2 * Cp * 4
    inter = nb * T * (7 * Cp) * 4                     # in-kernel f32 temporaries
    vmem_bytes = int(min(64 << 20,
                         max(32 << 20,
                             2 * (in_tile + out_tile) + 2 * weights + inter + (4 << 20))))

    kernel = functools.partial(_resnet_block_kernel, T=T, d=d)

    out_p = pl.pallas_call(
        kernel,
        out_shape=jax.ShapeDtypeStruct((N, T, Cp), x_ntc.dtype),
        grid=(N // nb,),
        in_specs=[
            pl.BlockSpec((nb, T + 2 * d, Cp), lambda n: (n, 0, 0)),   # x (nb batch elems)
            pl.BlockSpec((3 * Cp, Cp), lambda n: (0, 0)),             # wc
            pl.BlockSpec((1, Cp), lambda n: (0, 0)),                  # bc
            pl.BlockSpec((2 * Cp, Cp), lambda n: (0, 0)),             # wo
            pl.BlockSpec((1, Cp), lambda n: (0, 0)),                  # bo
        ],
        out_specs=pl.BlockSpec((nb, T, Cp), lambda n: (n, 0, 0)),
        compiler_params=pltpu.CompilerParams(
            dimension_semantics=("parallel",),
            vmem_limit_bytes=vmem_bytes,
        ),
    )(x_pad, wc, bc, wo, bo)

    return out_p[:, :, :C]


def resnet_block_forward(x_nct, params, dilation=1,
                         compute_dtype=jnp.bfloat16, batch_block=1):
    """PyTorch Conv1d layout: x_nct (N, C, T) -> (N, C, T).

    Note: in a full channels-last model, call resnet_block_forward_ntc directly and
    skip these two full-tensor transposes.
    """
    x_ntc = jnp.transpose(x_nct, (0, 2, 1))
    out_ntc = resnet_block_forward_ntc(x_ntc, params, dilation=dilation,
                                       compute_dtype=compute_dtype,
                                       batch_block=batch_block)
    return jnp.transpose(out_ntc, (0, 2, 1))


def init_params(key, dim):
    """Deterministic synthetic weights. Weight-norm (g * v / ||v||) applied here so
    the kernel consumes the effective conv weights."""
    ks = jax.random.split(key, 9)

    def wn(vkey, gkey, shape):
        v = jax.random.normal(vkey, shape, jnp.float32) * 0.1
        g = jax.random.uniform(gkey, (shape[0],), jnp.float32, minval=0.5, maxval=1.5)
        norm = jnp.sqrt(jnp.sum(v * v, axis=(1, 2), keepdims=True))
        return g[:, None, None] * v / norm

    return dict(
        w3=wn(ks[0], ks[1], (dim, dim, 3)),
        b3=jax.random.normal(ks[2], (dim,), jnp.float32) * 0.1,
        w1=wn(ks[3], ks[4], (dim, dim, 1)),
        b1=jax.random.normal(ks[5], (dim,), jnp.float32) * 0.1,
        ws=wn(ks[6], ks[7], (dim, dim, 1)),
        bs=jax.random.normal(ks[8], (dim,), jnp.float32) * 0.1,
    )


def ref_forward(x, params, dilation=1):
    """Pure-JAX reference mirroring the PyTorch module (NCT layout)."""
    w3, b3 = params["w3"], params["b3"]
    w1, b1 = params["w1"], params["b1"]
    ws, bs = params["ws"], params["bs"]
    N, C, T = x.shape
    d = dilation
    leaky = lambda z: jnp.where(z > 0, z, 0.2 * z)

    y_s = jnp.einsum("oi,nit->not", ws[:, :, 0], x) + bs[None, :, None]

    h = leaky(x)
    hp = jnp.pad(h, ((0, 0), (0, 0), (d, d)), mode="reflect")
    conv = sum(
        jnp.einsum("oi,nit->not", w3[:, :, k], hp[:, :, k * d:k * d + T])
        for k in range(3)
    ) + b3[None, :, None]
    h2 = leaky(conv)
    y_b = jnp.einsum("oi,nit->not", w1[:, :, 0], h2) + b1[None, :, None]
    return y_s + y_b


if __name__ == "__main__":
    key = jax.random.PRNGKey(0)
    kx, kp = jax.random.split(key)

    N, dim, T, dilation = 2, 4, 16, 1
    x = jax.random.normal(kx, (N, dim, T), jnp.float32)
    params = init_params(kp, dim)
    ref = ref_forward(x, params, dilation=dilation)

    # f32 compute path: tight tolerance vs the pure-JAX reference.
    out_f32 = resnet_block_forward(x, params, dilation=dilation,
                                   compute_dtype=jnp.float32, batch_block=2)
    out_f32 = jax.block_until_ready(out_f32)
    assert out_f32.shape == (N, dim, T)
    err_f32 = float(jnp.max(jnp.abs(out_f32 - ref)))
    assert err_f32 < 1e-4, f"f32 mismatch vs reference: {err_f32}"

    # bf16 compute path (f32 MXU accumulation): looser tolerance.
    out_bf16 = resnet_block_forward(x, params, dilation=dilation,
                                    compute_dtype=jnp.bfloat16, batch_block=2)
    out_bf16 = jax.block_until_ready(out_bf16)
    assert out_bf16.shape == (N, dim, T)
    err_bf16 = float(jnp.max(jnp.abs(out_bf16 - ref)))
    assert err_bf16 < 5e-2, f"bf16 mismatch vs reference: {err_bf16}"

    print("KERNEL_OK")
</pallas_src>

<mosaic_0001>
module attributes {stable_mosaic.version = 11 : i64} {
  func.func @_resnet_block_kernel(%arg0: i32, %arg1: memref<2x18x128xf32, #tpu.memory_space<vmem>>, %arg2: memref<384x128xf32, #tpu.memory_space<vmem>>, %arg3: memref<1x128xf32, #tpu.memory_space<vmem>>, %arg4: memref<256x128xf32, #tpu.memory_space<vmem>>, %arg5: memref<1x128xf32, #tpu.memory_space<vmem>>, %arg6: memref<2x16x128xf32, #tpu.memory_space<vmem>>) attributes {dimension_semantics = [#tpu.dimension_semantics<parallel>], iteration_bounds = array<i64: 1>, scalar_prefetch = 0 : i64, scratch_operands = 0 : i64, tpu.core_type = #tpu.core_type<tc>, window_params = [{transform_indices = @transform_0, window_bounds = array<i64: 2, 18, 128>}, {pipeline_mode = #tpu.pipeline_mode<synchronous>, transform_indices = @transform_1, window_bounds = array<i64: 384, 128>}, {pipeline_mode = #tpu.pipeline_mode<synchronous>, transform_indices = @transform_2, window_bounds = array<i64: 1, 128>}, {pipeline_mode = #tpu.pipeline_mode<synchronous>, transform_indices = @transform_3, window_bounds = array<i64: 256, 128>}, {pipeline_mode = #tpu.pipeline_mode<synchronous>, transform_indices = @transform_4, window_bounds = array<i64: 1, 128>}, {transform_indices = @transform_5, window_bounds = array<i64: 2, 16, 128>}]} {
    %c0 = arith.constant 0 : index
    %c0_0 = arith.constant 0 : index
    %c0_1 = arith.constant 0 : index
    %0 = vector.load %arg1[%c0, %c0_0, %c0_1] : memref<2x18x128xf32, #tpu.memory_space<vmem>>, vector<2x18x128xf32>
    %cst = arith.constant 0.000000e+00 : f32
    %1 = vector.broadcast %cst : f32 to vector<2x18x128xf32>
    %2 = arith.cmpf ogt, %0, %1 : vector<2x18x128xf32>
    %cst_2 = arith.constant 2.000000e-01 : f32
    %3 = vector.broadcast %cst_2 : f32 to vector<2x18x128xf32>
    %4 = arith.mulf %3, %0 : vector<2x18x128xf32>
    %5 = arith.select %2, %0, %4 : vector<2x18x128xi1>, vector<2x18x128xf32>
    %6 = vector.extract_strided_slice %5 {offsets = [0, 0, 0], sizes = [2, 16, 128], strides = [1, 1, 1]} : vector<2x18x128xf32> to vector<2x16x128xf32>
    %7 = vector.extract_strided_slice %5 {offsets = [0, 1, 0], sizes = [2, 16, 128], strides = [1, 1, 1]} : vector<2x18x128xf32> to vector<2x16x128xf32>
    %8 = vector.extract_strided_slice %5 {offsets = [0, 2, 0], sizes = [2, 16, 128], strides = [1, 1, 1]} : vector<2x18x128xf32> to vector<2x16x128xf32>
    %9 = tpu.concatenate %6, %7, %8 in 2 : vector<2x16x128xf32>, vector<2x16x128xf32>, vector<2x16x128xf32> -> vector<2x16x384xf32>
    %10 = vector.shape_cast %9 : vector<2x16x384xf32> to vector<32x384xf32>
    %c0_3 = arith.constant 0 : index
    %c0_4 = arith.constant 0 : index
    %11 = vector.load %arg2[%c0_3, %c0_4] : memref<384x128xf32, #tpu.memory_space<vmem>>, vector<384x128xf32>
    %cst_5 = arith.constant dense<0.000000e+00> : vector<32x128xf32>
    %12 = tpu.matmul %10, %11, %cst_5 {dimension_numbers = #tpu.dot_dimension_numbers<[1], [0], [0], [1], [0, 0, 1, 1], [], []>} : vector<32x384xf32>, vector<384x128xf32>, vector<32x128xf32> -> vector<32x128xf32>
    %c0_6 = arith.constant 0 : index
    %c0_7 = arith.constant 0 : index
    %13 = vector.load %arg3[%c0_6, %c0_7] : memref<1x128xf32, #tpu.memory_space<vmem>>, vector<1x128xf32>
    %14 = vector.broadcast %13 : vector<1x128xf32> to vector<32x128xf32>
    %15 = arith.addf %12, %14 : vector<32x128xf32>
    %cst_8 = arith.constant 0.000000e+00 : f32
    %16 = vector.broadcast %cst_8 : f32 to vector<32x128xf32>
    %17 = arith.cmpf ogt, %15, %16 : vector<32x128xf32>
    %cst_9 = arith.constant 2.000000e-01 : f32
    %18 = vector.broadcast %cst_9 : f32 to vector<32x128xf32>
    %19 = arith.mulf %18, %15 : vector<32x128xf32>
    %20 = arith.select %17, %15, %19 : vector<32x128xi1>, vector<32x128xf32>
    %21 = vector.extract_strided_slice %0 {offsets = [0, 1, 0], sizes = [2, 16, 128], strides = [1, 1, 1]} : vector<2x18x128xf32> to vector<2x16x128xf32>
    %22 = vector.shape_cast %21 : vector<2x16x128xf32> to vector<32x128xf32>
    %23 = tpu.concatenate %22, %20 in 1 : vector<32x128xf32>, vector<32x128xf32> -> vector<32x256xf32>
    %c0_10 = arith.constant 0 : index
    %c0_11 = arith.constant 0 : index
    %24 = vector.load %arg4[%c0_10, %c0_11] : memref<256x128xf32, #tpu.memory_space<vmem>>, vector<256x128xf32>
    %cst_12 = arith.constant dense<0.000000e+00> : vector<32x128xf32>
    %25 = tpu.matmul %23, %24, %cst_12 {dimension_numbers = #tpu.dot_dimension_numbers<[1], [0], [0], [1], [0, 0, 1, 1], [], []>} : vector<32x256xf32>, vector<256x128xf32>, vector<32x128xf32> -> vector<32x128xf32>
    %c0_13 = arith.constant 0 : index
    %c0_14 = arith.constant 0 : index
    %26 = vector.load %arg5[%c0_13, %c0_14] : memref<1x128xf32, #tpu.memory_space<vmem>>, vector<1x128xf32>
    %27 = vector.broadcast %26 : vector<1x128xf32> to vector<32x128xf32>
    %28 = arith.addf %25, %27 : vector<32x128xf32>
    %29 = vector.shape_cast %28 : vector<32x128xf32> to vector<2x16x128xf32>
    %c0_15 = arith.constant 0 : index
    %c0_16 = arith.constant 0 : index
    %c0_17 = arith.constant 0 : index
    %30 = vector.load %arg6[%c0_15, %c0_16, %c0_17] : memref<2x16x128xf32, #tpu.memory_space<vmem>>, vector<2x16x128xf32>
    tpu.vector_store %arg6[%c0_15, %c0_16, %c0_17], %29 {strides = array<i32>} : memref<2x16x128xf32, #tpu.memory_space<vmem>>, vector<2x16x128xf32>,
    return
  }
  func.func @transform_0(%arg0: i32) -> (i32, i32, i32) {
    %c0_i32 = arith.constant 0 : i32
    %c0_i32_0 = arith.constant 0 : i32
    %c0_i32_1 = arith.constant 0 : i32
    return %arg0, %c0_i32, %c0_i32_0 : i32, i32, i32
  }
  func.func @transform_1(%arg0: i32) -> (i32, i32) {
    %c0_i32 = arith.constant 0 : i32
    %c0_i32_0 = arith.constant 0 : i32
    %c0_i32_1 = arith.constant 0 : i32
    return %c0_i32, %c0_i32_0 : i32, i32
  }
  func.func @transform_2(%arg0: i32) -> (i32, i32) {
    %c0_i32 = arith.constant 0 : i32
    %c0_i32_0 = arith.constant 0 : i32
    %c0_i32_1 = arith.constant 0 : i32
    return %c0_i32, %c0_i32_0 : i32, i32
  }
  func.func @transform_3(%arg0: i32) -> (i32, i32) {
    %c0_i32 = arith.constant 0 : i32
    %c0_i32_0 = arith.constant 0 : i32
    %c0_i32_1 = arith.constant 0 : i32
    return %c0_i32, %c0_i32_0 : i32, i32
  }
  func.func @transform_4(%arg0: i32) -> (i32, i32) {
    %c0_i32 = arith.constant 0 : i32
    %c0_i32_0 = arith.constant 0 : i32
    %c0_i32_1 = arith.constant 0 : i32
    return %c0_i32, %c0_i32_0 : i32, i32
  }
  func.func @transform_5(%arg0: i32) -> (i32, i32, i32) {
    %c0_i32 = arith.constant 0 : i32
    %c0_i32_0 = arith.constant 0 : i32
    %c0_i32_1 = arith.constant 0 : i32
    return %arg0, %c0_i32, %c0_i32_0 : i32, i32, i32
  }
}

</mosaic_0001>

<bundles_post_ra>
// kernel: tpu_custom_call.1
= control target key start
LH: loop header
LB: loop body
LE: loop exit
PB: predicated region body
PF: predicated region fallthrough
CT: control target
= control target key end

     0   :  { %10 = vsyncpa [#allocation3], 0  ;;  %s736_s0 = inlined_call_operand.vmem [shape: f32[2,18,128], index: 0, kind: input, shape index: {}]   ;;  %s737_s1 = inlined_call_operand.hbm [shape: f32[384,128], index: 1, kind: input, shape index: {}]   ;;  %s738_s2 = inlined_call_operand.vmem [shape: f32[1,128], index: 2, kind: input, shape index: {}]   ;;  %s739_s3 = inlined_call_operand.hbm [shape: f32[256,128], index: 3, kind: input, shape index: {}]   ;;  %s740_s4 = inlined_call_operand.vmem [shape: f32[1,128], index: 4, kind: input, shape index: {}]   ;;  %s741_s5 = inlined_call_operand.hbm [shape: f32[2,16,128], index: 5, kind: output, shape index: {}]  }
   0x1   :  { %11 = vsyncpa [#allocation6], 0 }
   0x2   :  { %12 = vsyncpa [#allocation4], 0  ;;  %s19_s20 = sshll.u32 %s737_s1, 4  ;;  %s535_s21 = smov [#allocation2]   ;;  %s20_s20 = int_to_ptr.hbm [resolvable:$true] %s19_s20 }
   0x3   :  { %s21_s22 = sshll.u32 %s535_s21, 4  ;;  %s34_s25 = sshll.u32 %s739_s3, 4  ;;  %s22_s22 = int_to_ptr.vmem [resolvable:$true] %s21_s22  ;;  %s35_s25 = int_to_ptr.hbm [resolvable:$true] %s34_s25 }
   0x4   :  { %s536_s26 = smov 128   ;;  %s537_s27 = smov 8  }
   0x5   :  { %27 = dma.hbm_to_vmem [thread:$0]  %s20_s20, 6144, %s22_s22, [#allocation3], %s536_s26, %s536_s26, %s537_s27  }
   0x6   :  { %s538_s28 = smov [#allocation5]  }
   0x7   :  { %s36_s29 = sshll.u32 %s538_s28, 4  ;;  %s37_s29 = int_to_ptr.vmem [resolvable:$true] %s36_s29 }
   0x8   :  { %42 = dma.hbm_to_vmem [thread:$0]  %s35_s25, 4096, %s37_s29, [#allocation6], %s536_s26, %s536_s26, %s537_s27  }
   0x9   :  { %529 = dma.done.wait [#allocation3], 6144  }
   0xa   :  { %530 = vsyncadd [#allocation3], 4294961152 }
   0xb   :  { %531 = dma.done.wait [#allocation6], 4096  }
   0xc   :  { %532 = vsyncadd [#allocation6], 4294963200  ;;  %v160_v0 = vld [vmem:[#allocation2 + $0x178] sm:$0xff]  ;;  %v159_v2 = vld [vmem:[#allocation2 + $0x170] sm:$0xff]  ;;  %vm98_vm2 = vcmask 1045504   ;;  %vm83_vm4 = vcmask 1046528  }
   0xd   :  { %v128_v1 = vld [vmem:[#allocation2 + $0x78] sm:$0xff]  ;;  %223 = vmatpush.msra.mxu2 %v160_v0  ;;  %v127_v3 = vld [vmem:[#allocation2 + $0x70] sm:$0xff]  ;;  %v158_v5 = vld [vmem:[#allocation2 + $0x168] sm:$0xff]  ;;  %s539_s17 = smov [#allocation7]  }
   0xe   :  { %165 = vmatpush.msra.mxu0 %v128_v1  ;;  %v144_v4 = vld [vmem:[#allocation2 + $0xf8] sm:$0xff]  ;;  %v126_v6 = vld [vmem:[#allocation2 + $0x68] sm:$0xff]  ;;  %v143_v7 = vld [vmem:[#allocation2 + $0xf0] sm:$0xff]  ;;  %s386_s18 = sshll.u32 %s539_s17, 4  ;;  %s387_s18 = int_to_ptr.vmem [resolvable:$true] %s386_s18 }
   0xf   :  { %194 = vmatpush.msra.mxu1 %v144_v4  ;;  %224 = vmatpush.msra.mxu2 %v159_v2  ;;  %v142_v8 = vld [vmem:[#allocation2 + $0xe8] sm:$0xff]  ;;  %v157_v9 = vld [vmem:[#allocation2 + $0x160] sm:$0xff]  ;;  %v156_v12 = vld [vmem:[#allocation2 + $0x158] sm:$0xff] }
  0x10   :  { %166 = vmatpush.msra.mxu0 %v127_v3  ;;  %v125_v10 = vld [vmem:[#allocation2 + $0x60] sm:$0xff]  ;;  %v124_v13 = vld [vmem:[#allocation2 + $0x58] sm:$0xff]  ;;  %v155_v15 = vld [vmem:[#allocation2 + $0x150] sm:$0xff] }
  0x11   :  { %195 = vmatpush.msra.mxu1 %v143_v7  ;;  %225 = vmatpush.msra.mxu2 %v158_v5  ;;  %v141_v11 = vld [vmem:[#allocation2 + $0xe0] sm:$0xff]  ;;  %v140_v14 = vld [vmem:[#allocation2 + $0xd8] sm:$0xff]  ;;  %v123_v16 = vld [vmem:[#allocation2 + $0x50] sm:$0xff] }
  0x12   :  { %167 = vmatpush.msra.mxu0 %v126_v6  ;;  %v139_v17 = vld [vmem:[#allocation2 + $0xd0] sm:$0xff]  ;;  %v154_v18 = vld [vmem:[#allocation2 + $0x148] sm:$0xff]  ;;  %v153_v21 = vld [vmem:[#allocation2 + $0x140] sm:$0xff] }
  0x13   :  { %196 = vmatpush.msra.mxu1 %v142_v8  ;;  %226 = vmatpush.msra.mxu2 %v157_v9  ;;  %v122_v19 = vld [vmem:[#allocation2 + $0x48] sm:$0xff]  ;;  %v121_v22 = vld [vmem:[#allocation2 + $0x40] sm:$0xff]  ;;  %v152_v24 = vld [vmem:[#allocation2 + $0x138] sm:$0xff] }
  0x14   :  { %168 = vmatpush.msra.mxu0 %v125_v10  ;;  %v138_v20 = vld [vmem:[#allocation2 + $0xc8] sm:$0xff]  ;;  %v137_v23 = vld [vmem:[#allocation2 + $0xc0] sm:$0xff]  ;;  %v120_v25 = vld [vmem:[#allocation2 + $0x38] sm:$0xff] }
  0x15   :  { %197 = vmatpush.msra.mxu1 %v141_v11  ;;  %227 = vmatpush.msra.mxu2 %v156_v12  ;;  %v136_v26 = vld [vmem:[#allocation2 + $0xb8] sm:$0xff]  ;;  %v585_v27 = vld [vmem:[%s736_s0] sm:$0xff]  ;;  %v590_v28 = vld [vmem:[%s736_s0 + $0x8] sm:$0xff] }
  0x16   :  { %169 = vmatpush.msra.mxu0 %v124_v13  ;;  %v151_v29 = vld [vmem:[#allocation2 + $0x130] sm:$0xff]  ;;  %v150_v32 = vld [vmem:[#allocation2 + $0x128] sm:$0xff]  ;;  %v65_v34 = vmul.f32 0.2, %v585_v27  ;;  %v66_v35 = vmul.f32 0.2, %v590_v28 }
  0x17   :  { %198 = vmatpush.msra.mxu1 %v140_v14  ;;  %228 = vmatpush.msra.mxu2 %v155_v15  ;;  %v119_v30 = vld [vmem:[#allocation2 + $0x30] sm:$0xff]  ;;  %v118_v33 = vld [vmem:[#allocation2 + $0x28] sm:$0xff]  ;;  %vm59_vm0 = vcmp.gt.f32.partialorder %v585_v27, 0.0  ;;  %vm60_vm1 = vcmp.gt.f32.partialorder %v590_v28, 0.0  ;;  %v149_v37 = vld [vmem:[#allocation2 + $0x120] sm:$0xff] }
  0x18   :  { %170 = vmatpush.msra.mxu0 %v123_v16  ;;  %v135_v31 = vld [vmem:[#allocation2 + $0xb0] sm:$0xff]  ;;  %v134_v36 = vld [vmem:[#allocation2 + $0xa8] sm:$0xff]  ;;  %v117_v38 = vld [vmem:[#allocation2 + $0x20] sm:$0xff]  ;;  %v71_v42 = vsel %vm59_vm0, %v585_v27, %v65_v34  ;;  %v598_v43 = vsel %vm60_vm1, %v590_v28, %v66_v35 }
  0x19   :  { %199 = vmatpush.msra.mxu1 %v139_v17  ;;  %229 = vmatpush.msra.mxu2 %v154_v18  ;;  %v133_v39 = vld [vmem:[#allocation2 + $0xa0] sm:$0xff]  ;;  %v148_v40 = vld [vmem:[#allocation2 + $0x118] sm:$0xff]  ;;  %v603_v45 = vld [vmem:[%s736_s0 + $0x10] sm:$0x3]  ;;  %v99_v49 = vrot.slane %v71_v42, 2  ;;  %v100_v50 = vrot.slane %v598_v43, 2 }
  0x1a   :  { %171 = vmatpush.msra.mxu0 %v122_v19  ;;  %v116_v41 = vld [vmem:[#allocation2 + $0x18] sm:$0xff]  ;;  %v147_v46 = vld [vmem:[#allocation2 + $0x110] sm:$0xff]  ;;  %v146_v51 = vld [vmem:[#allocation2 + $0x108] sm:$0xff]  ;;  %v67_v53 = vmul.f32 0.2, %v603_v45  ;;  %v84_v56 = vrot.slane %v71_v42, 1 }
  0x1b   :  { %200 = vmatpush.msra.mxu1 %v138_v20  ;;  %230 = vmatpush.msra.mxu2 %v153_v21  ;;  %v132_v44 = vld [vmem:[#allocation2 + $0x98] sm:$0xff]  ;;  %v115_v47 = vld [vmem:[#allocation2 + $0x10] sm:$0xff]  ;;  %v114_v52 = vld [vmem:[#allocation2 + $0x8] sm:$0xff]  ;;  %v85_v57 = vrot.slane %v598_v43, 1  ;;  %vm61_vm3 = vcmp.gt.f32.partialorder %v603_v45, 0.0  ;;  %v101_v61 = vsel %vm98_vm2, %v99_v49, %v100_v50 }
  0x1c   :  { %172 = vmatpush.msra.mxu0 %v121_v22  ;;  %v131_v48 = vld [vmem:[#allocation2 + $0x90] sm:$0xff]  ;;  %v299_v54 = vld [vmem:[#allocation5 + $0x78] sm:$0xff]  ;;  %v130_v55 = vld [vmem:[#allocation2 + $0x88] sm:$0xff]  ;;  %v73_v63 = vsel %vm61_vm3, %v603_v45, %v67_v53  ;;  %v270_v53 = vrot.slane %v585_v27, 1 }
  0x1d   :  { %201 = vmatpush.msra.mxu1 %v137_v23  ;;  %231 = vmatpush.msra.mxu2 %v152_v24  ;;  %v298_v58 = vld [vmem:[#allocation5 + $0x70] sm:$0xff]  ;;  %v145_v59 = vld [vmem:[#allocation2 + $0x100] sm:$0xff]  ;;  %v297_v0 = vld [vmem:[#allocation5 + $0x68] sm:$0xff]  ;;  %v86_v1 = vsel %vm83_vm4, %v84_v56, %v85_v57  ;;  %v102_v6 = vrot.slane %v73_v63, 2  ;;  %v87_v11 = vrot.slane %v73_v63, 1 }
  0x1e   :  { %173 = vmatpush.msra.mxu0 %v120_v25  ;;  %v113_v60 = vld [vmem:[#allocation2] sm:$0xff]  ;;  %320 = vmatpush.msra.mxu3 %v299_v54  ;;  %v615_v2 = vld [vmem:[%s736_s0 + $0x18] sm:$0xff]  ;;  %v624_v7 = vld [vmem:[#allocation5 + $0xf0] sm:$0xff]  ;;  %v271_v54 = vrot.slane %v590_v28, 1 }
  0x1f   :  { %202 = vmatpush.msra.mxu1 %v136_v26  ;;  %232 = vmatpush.msra.mxu2 %v151_v29  ;;  %v129_v62 = vld [vmem:[#allocation2 + $0x80] sm:$0xff]  ;;  %v622_v4 = vld [vmem:[#allocation5 + $0xf8] sm:$0xff]  ;;  %v68_v8 = vmul.f32 0.2, %v615_v2  ;;  %vm62_vm5 = vcmp.gt.f32.partialorder %v615_v2, 0.0  ;;  %v631_v12 = vld [vmem:[#allocation5 + $0xe8] sm:$0xff]  ;;  %v103_v14 = vsel %vm98_vm2, %v100_v50, %v102_v6  ;;  %v88_v19 = vsel %vm83_vm4, %v85_v57, %v87_v11 }
  0x20   :  { %174 = vmatpush.msra.mxu0 %v119_v30  ;;  %321 = vmatpush.msra.mxu3 %v298_v58  ;;  %v620_v3 = vld [vmem:[%s736_s0 + $0x20] sm:$0xff]  ;;  %v295_v10 = vld [vmem:[#allocation5 + $0x58] sm:$0xff]  ;;  %v294_v13 = vld [vmem:[#allocation5 + $0x50] sm:$0xff]  ;;  %v273_v58 = vrot.slane %v603_v45, 1 }
  0x21   :  { %203 = vmatpush.msra.mxu1 %v135_v31  ;;  %233 = vmatpush.msra.mxu2 %v150_v32  ;;  %v296_v5 = vld [vmem:[#allocation5 + $0x60] sm:$0xff]  ;;  %v69_v9 = vmul.f32 0.2, %v620_v3  ;;  %vm63_vm6 = vcmp.gt.f32.partialorder %v620_v3, 0.0  ;;  %v74_v15 = vsel %vm62_vm5, %v615_v2, %v68_v8  ;;  %v293_v17 = vld [vmem:[#allocation5 + $0x48] sm:$0xff]  ;;  %v654_v22 = vld [vmem:[#allocation5 + $0xd8] sm:$0xff] }
  0x22   :  { %175 = vmatpush.msra.mxu0 %v118_v33  ;;  %322 = vmatpush.msra.mxu3 %v297_v0  ;;  %v643_v18 = vld [vmem:[#allocation5 + $0xe0] sm:$0xff]  ;;  %v650_v20 = vld [vmem:[%s736_s0 + $0x28] sm:$0x3]  ;;  %v104_v23 = vrot.slane %v74_v15, 2  ;;  %v291_v26 = vld [vmem:[#allocation5 + $0x38] sm:$0xff]  ;;  %v89_v30 = vrot.slane %v74_v15, 1 }
  0x23   :  { %204 = vmatpush.msra.mxu1 %v134_v36  ;;  %234 = vmatpush.msra.mxu2 %v149_v37  ;;  %v640_v16 = vsel %vm63_vm6, %v620_v3, %v69_v9  ;;  %v292_v21 = vld [vmem:[#allocation5 + $0x40] sm:$0xff]  ;;  %v70_v25 = vmul.f32 0.2, %v650_v20  ;;  %v659_v29 = vld [vmem:[#allocation5 + $0xd0] sm:$0xff]  ;;  %vm64_vm7 = vcmp.gt.f32.partialorder %v650_v20, 0.0  ;;  %v665_v33 = vld [vmem:[#allocation5 + $0xc8] sm:$0xff] }
  0x24   :  { %176 = vmatpush.msra.mxu0 %v117_v38  ;;  %323 = vmatpush.msra.mxu3 %v296_v5  ;;  %v105_v24 = vrot.slane %v640_v16, 2  ;;  %v90_v31 = vrot.slane %v640_v16, 1  ;;  %v290_v32 = vld [vmem:[#allocation5 + $0x30] sm:$0xff]  ;;  %v289_v36 = vld [vmem:[#allocation5 + $0x28] sm:$0xff]  ;;  %v672_v37 = vld [vmem:[#allocation5 + $0xc0] sm:$0xff]  ;;  %v276_v45 = vrot.slane %v620_v3, 1 }
  0x25   :  { %205 = vmatpush.msra.mxu1 %v133_v39  ;;  %235 = vmatpush.msra.mxu2 %v148_v40  ;;  %v76_v35 = vsel %vm64_vm7, %v650_v20, %v70_v25  ;;  %v288_v39 = vld [vmem:[#allocation5 + $0x20] sm:$0xff]  ;;  %v678_v40 = vld [vmem:[#allocation5 + $0xb8] sm:$0xff]  ;;  %v285_v49 = vld [vmem:[#allocation5 + $0x8] sm:$0xff] }
  0x26   :  { %177 = vmatpush.msra.mxu0 %v116_v41  ;;  %324 = vmatpush.msra.mxu3 %v295_v10  ;;  %v106_v34 = vsel %vm98_vm2, %v104_v23, %v105_v24  ;;  %v91_v38 = vsel %vm83_vm4, %v89_v30, %v90_v31  ;;  %v107_v41 = vrot.slane %v76_v35, 2  ;;  %v303_v56 = vld [vmem:[#allocation5 + $0x98] sm:$0xff]  ;;  %v302_v57 = vld [vmem:[#allocation5 + $0x90] sm:$0xff]  ;;  %v301_v27 = vld [vmem:[#allocation5 + $0x88] sm:$0xff] }
  0x27   :  { %206 = vmatpush.msra.mxu1 %v132_v44  ;;  %236 = vmatpush.msra.mxu2 %v147_v46  ;;  %v92_v44 = vrot.slane %v76_v35, 1  ;;  %v286_v46 = vld [vmem:[#allocation5 + $0x10] sm:$0xff]  ;;  %v300_v28 = vld [vmem:[#allocation5 + $0x80] sm:$0xff] }
  0x28   :  { %178 = vmatpush.msra.mxu0 %v115_v47  ;;  %325 = vmatpush.msra.mxu3 %v294_v13  ;;  %v686_v47 = vld [vmem:[#allocation5 + $0xa8] sm:$0xff]  ;;  %v455_v0 = vld [vmem:[%s738_s2] ss:$0 sm:$0xff] }
  0x29   :  { %207 = vmatpush.msra.mxu1 %v131_v48  ;;  %237 = vmatpush.msra.mxu2 %v146_v51  ;;  %v108_v48 = vsel %vm98_vm2, %v105_v24, %v107_v41  ;;  %v93_v50 = vsel %vm83_vm4, %v90_v31, %v92_v44  ;;  %v284_v51 = vld [vmem:[#allocation5] sm:$0xff] }
  0x2a   :  { %179 = vmatpush.msra.mxu0 %v114_v52  ;;  %326 = vmatpush.msra.mxu3 %v293_v17  ;;  %v304_v52 = vld [vmem:[#allocation5 + $0xa0] sm:$0xff] }
  0x2b   :  { %208 = vmatpush.msra.mxu1 %v130_v55  ;;  %238 = vmatpush.msra.mxu2 %v145_v59  ;;  %v272_v55 = vsel %vm83_vm4, %v270_v53, %v271_v54  ;;  %v274_v59 = vsel %vm83_vm4, %v271_v54, %v273_v58 }
  0x2c   :  { %180 = vmatpush.msra.mxu0 %v113_v60  ;;  %239 = vmatmul.f32.vlgmr.msra.gmra.mxu2 %v101_v61  ;;  %v275_v60 = vrot.slane %v615_v2, 1 }
  0x2d   :  { %181 = vmatmul.f32.vlgmr.msra.gmra.mxu0 %v71_v42  ;;  %209 = vmatpush.msra.mxu1 %v129_v62  ;;  %v287_v42 = vld [vmem:[#allocation5 + $0x18] sm:$0xff]  ;;  %v278_v62 = vrot.slane %v650_v20, 1 }
  0x2e   :  { %210 = vmatmul.f32.vlgmr.msra.gmra.mxu1 %v86_v1  ;;  %349 = vmatpush.msrb.mxu0 %v622_v4  ;;  %v277_v61 = vsel %vm83_vm4, %v275_v60, %v276_v45 }
  0x2f   :  { %402 = vmatpush.msrb.mxu1 %v622_v4  ;;  %403 = vmatpush.msrb.mxu2 %v622_v4  ;;  %v279_v63 = vsel %vm83_vm4, %v276_v45, %v278_v62 }
  0x30   :  { %350 = vmatpush.msrb.mxu0 %v624_v7  ;;  %327 = vmatpush.msra.mxu3 %v292_v21 }
  0x31   :  { %405 = vmatpush.msrb.mxu1 %v624_v7  ;;  %406 = vmatpush.msrb.mxu2 %v624_v7 }
  0x32   :  { %351 = vmatpush.msrb.mxu0 %v631_v12  ;;  %328 = vmatpush.msra.mxu3 %v291_v26 }
  0x33   :  { %408 = vmatpush.msrb.mxu1 %v631_v12  ;;  %409 = vmatpush.msrb.mxu2 %v631_v12 }
  0x34   :  { %242 = vmatmul.f32.gmra.mxu2 %v103_v14  ;;  %352 = vmatpush.msrb.mxu0 %v643_v18 }
  0x35   :  { %184 = vmatmul.f32.gmra.mxu0 %v598_v43  ;;  %411 = vmatpush.msrb.mxu1 %v643_v18  ;;  %v681_v43 = vld [vmem:[#allocation5 + $0xb0] sm:$0xff] }
  0x36   :  { %213 = vmatmul.f32.gmra.mxu1 %v88_v19  ;;  %353 = vmatpush.msrb.mxu0 %v654_v22 }
  0x37   :  { %412 = vmatpush.msrb.mxu2 %v643_v18  ;;  %414 = vmatpush.msrb.mxu1 %v654_v22 }
  0x38   :  { %354 = vmatpush.msrb.mxu0 %v659_v29  ;;  %329 = vmatpush.msra.mxu3 %v290_v32 }
  0x39   :  { %415 = vmatpush.msrb.mxu2 %v654_v22  ;;  %417 = vmatpush.msrb.mxu1 %v659_v29 }
  0x3a   :  { %355 = vmatpush.msrb.mxu0 %v665_v33  ;;  %330 = vmatpush.msra.mxu3 %v289_v36  ;;  %v456_v36 = vld [vmem:[%s740_s4] ss:$0 sm:$0xff]  ;;  %s388_s4 = sshll.u32 %s741_s5, 4  ;;  %s389_s4 = int_to_ptr.hbm [resolvable:$true] %s388_s4 }
  0x3b   :  { %418 = vmatpush.msrb.mxu2 %v659_v29  ;;  %420 = vmatpush.msrb.mxu1 %v665_v33 }
  0x3c   :  { %245 = vmatmul.f32.gmra.mxu2 %v106_v34  ;;  %356 = vmatpush.msrb.mxu0 %v672_v37 }
  0x3d   :  { %187 = vmatmul.f32.gmra.mxu0 %v74_v15  ;;  %331 = vmatpush.msra.mxu3 %v288_v39 }
  0x3e   :  { %216 = vmatmul.f32.gmra.mxu1 %v91_v38  ;;  %357 = vmatpush.msrb.mxu0 %v678_v40 }
  0x3f   :  { %421 = vmatpush.msrb.mxu2 %v665_v33  ;;  %332 = vmatpush.msra.mxu3 %v287_v42 }
  0x40   :  { %358 = vmatpush.msrb.mxu0 %v681_v43  ;;  %423 = vmatpush.msrb.mxu1 %v672_v37 }
  0x41   :  { %424 = vmatpush.msrb.mxu2 %v672_v37  ;;  %333 = vmatpush.msra.mxu3 %v286_v46 }
  0x42   :  { %359 = vmatpush.msrb.mxu0 %v686_v47  ;;  %426 = vmatpush.msrb.mxu1 %v678_v40 }
  0x43   :  { %334 = vmatpush.msra.mxu3 %v285_v49  ;;  %427 = vmatpush.msrb.mxu2 %v678_v40 }
  0x44   :  { %248 = vmatmul.f32.gmra.mxu2 %v108_v48  ;;  %429 = vmatpush.msrb.mxu1 %v681_v43 }
  0x45   :  { %190 = vmatmul.f32.gmra.mxu0 %v640_v16  ;;  %430 = vmatpush.msrb.mxu2 %v681_v43 }
  0x46   :  { %219 = vmatmul.f32.gmra.mxu1 %v93_v50  ;;  %335 = vmatpush.msra.mxu3 %v284_v51 }
  0x47   :  { %433 = vmatpush.msrb.mxu2 %v686_v47  ;;  %432 = vmatpush.msrb.mxu1 %v686_v47 }
  0x48   :  { %360 = vmatpush.msrb.mxu0 %v304_v52  ;;  %404 = vmatpush.msrb.mxu3 %v622_v4 }
  0x49   :  { %435 = vmatpush.msrb.mxu1 %v304_v52  ;;  %336 = vmatmul.f32.vlgmr.msra.gmra.mxu3 %v272_v55 }
  0x4a   :  { %361 = vmatpush.msrb.mxu0 %v303_v56  ;;  %407 = vmatpush.msrb.mxu3 %v624_v7 }
  0x4b   :  { %438 = vmatpush.msrb.mxu1 %v303_v56  ;;  %436 = vmatpush.msrb.mxu2 %v304_v52 }
  0x4c   :  { %362 = vmatpush.msrb.mxu0 %v302_v57  ;;  %410 = vmatpush.msrb.mxu3 %v631_v12 }
  0x4d   :  { %441 = vmatpush.msrb.mxu1 %v302_v57  ;;  %439 = vmatpush.msrb.mxu2 %v303_v56 }
  0x4e   :  { %363 = vmatpush.msrb.mxu0 %v301_v27  ;;  %413 = vmatpush.msrb.mxu3 %v643_v18 }
  0x4f   :  { %444 = vmatpush.msrb.mxu1 %v301_v27  ;;  %442 = vmatpush.msrb.mxu2 %v302_v57 }
  0x50   :  { %364 = vmatpush.msrb.mxu0 %v300_v28  ;;  %416 = vmatpush.msrb.mxu3 %v654_v22 }
  0x51   :  { %339 = vmatmul.f32.gmra.mxu3 %v274_v59  ;;  %447 = vmatpush.msrb.mxu1 %v300_v28 }
  0x52   :  { %419 = vmatpush.msrb.mxu3 %v659_v29  ;;  %445 = vmatpush.msrb.mxu2 %v301_v27 }
  0x54   :  { %422 = vmatpush.msrb.mxu3 %v665_v33  ;;  %448 = vmatpush.msrb.mxu2 %v300_v28 }
  0x56   :  { %425 = vmatpush.msrb.mxu3 %v672_v37 }
  0x58   :  { %428 = vmatpush.msrb.mxu3 %v678_v40 }
  0x59   :  { %342 = vmatmul.f32.gmra.mxu3 %v277_v61 }
  0x5a   :  { %431 = vmatpush.msrb.mxu3 %v681_v43 }
  0x5c   :  { %434 = vmatpush.msrb.mxu3 %v686_v47 }
  0x5e   :  { %437 = vmatpush.msrb.mxu3 %v304_v52 }
  0x60   :  { %440 = vmatpush.msrb.mxu3 %v303_v56 }
  0x61   :  { %345 = vmatmul.f32.gmra.mxu3 %v279_v63 }
  0x62   :  { %443 = vmatpush.msrb.mxu3 %v302_v57 }
  0x64   :  { %446 = vmatpush.msrb.mxu3 %v301_v27 }
  0x66   :  { %449 = vmatpush.msrb.mxu3 %v300_v28 }
  0xaa   :  { %v182_v1 = vpop.f32.mrf.mxu0 }
  0xab   :  { %v183_v2 = vadd.f32 %v455_v0, %v182_v1  ;;  %v211_v3 = vpop.f32.mrf.mxu1 }
  0xad   :  { %v212_v4 = vadd.f32 %v211_v3, %v183_v2 }
  0xaf   :  { %v240_v5 = vpop.f32.mrf.mxu2 }
  0xb0   :  { %v241_v6 = vadd.f32 %v240_v5, %v212_v4 }
  0xb2   :  { %v185_v7 = vpop.f32.mrf.mxu0  ;;  %v256_v8 = vmul.f32 0.2, %v241_v6  ;;  %vm252_vm8 = vcmp.gt.f32.partialorder %v241_v6, 0.0 }
  0xb3   :  { %v186_v9 = vadd.f32 %v455_v0, %v185_v7  ;;  %v214_v10 = vpop.f32.mrf.mxu1 }
  0xb4   :  { %v260_v12 = vsel %vm252_vm8, %v241_v6, %v256_v8 }
  0xb5   :  { %v215_v11 = vadd.f32 %v214_v10, %v186_v9  ;;  %365 = vmatmul.f32.vlgmr.msrb.gmra.mxu0 %v260_v12 }
  0xb7   :  { %v243_v13 = vpop.f32.mrf.mxu2 }
  0xb8   :  { %v244_v14 = vadd.f32 %v243_v13, %v215_v11 }
  0xba   :  { %v188_v15 = vpop.f32.mrf.mxu0  ;;  %v257_v16 = vmul.f32 0.2, %v244_v14  ;;  %vm253_vm9 = vcmp.gt.f32.partialorder %v244_v14, 0.0 }
  0xbb   :  { %v189_v17 = vadd.f32 %v455_v0, %v188_v15  ;;  %v217_v18 = vpop.f32.mrf.mxu1 }
  0xbc   :  { %v261_v20 = vsel %vm253_vm9, %v244_v14, %v257_v16 }
  0xbd   :  { %v218_v19 = vadd.f32 %v217_v18, %v189_v17  ;;  %368 = vmatmul.f32.vlgmr.msrb.gmra.mxu1 %v261_v20 }
  0xbf   :  { %v246_v21 = vpop.f32.mrf.mxu2 }
  0xc0   :  { %v247_v22 = vadd.f32 %v246_v21, %v218_v19 }
  0xc2   :  { %v191_v23 = vpop.f32.mrf.mxu0  ;;  %v258_v24 = vmul.f32 0.2, %v247_v22  ;;  %vm254_vm10 = vcmp.gt.f32.partialorder %v247_v22, 0.0 }
  0xc3   :  { %v192_v25 = vadd.f32 %v455_v0, %v191_v23  ;;  %v220_v26 = vpop.f32.mrf.mxu1 }
  0xc4   :  { %v262_v30 = vsel %vm254_vm10, %v247_v22, %v258_v24 }
  0xc5   :  { %v221_v29 = vadd.f32 %v220_v26, %v192_v25  ;;  %371 = vmatmul.f32.vlgmr.msrb.gmra.mxu2 %v262_v30 }
  0xc7   :  { %v249_v31 = vpop.f32.mrf.mxu2 }
  0xc8   :  { %v250_v32 = vadd.f32 %v249_v31, %v221_v29 }
  0xca   :  { %v259_v33 = vmul.f32 0.2, %v250_v32  ;;  %vm255_vm11 = vcmp.gt.f32.partialorder %v250_v32, 0.0 }
  0xcc   :  { %v263_v34 = vsel %vm255_vm11, %v250_v32, %v259_v33  ;;  %v337_v35 = vpop.f32.mrf.mxu3 }
  0xcd   :  { %374 = vmatmul.f32.vlgmr.msrb.gmra.mxu3 %v263_v34  ;;  %v338_v37 = vadd.f32 %v456_v36, %v337_v35 }
  0xd4   :  { %v340_v39 = vpop.f32.mrf.mxu3 }
  0xd5   :  { %v341_v41 = vadd.f32 %v456_v36, %v340_v39 }
  0xdc   :  { %v343_v44 = vpop.f32.mrf.mxu3 }
  0xdd   :  { %v344_v47 = vadd.f32 %v456_v36, %v343_v44 }
  0xe4   :  { %v346_v46 = vpop.f32.mrf.mxu3 }
  0xe5   :  { %v347_v50 = vadd.f32 %v456_v36, %v346_v46 }
 0x132   :  { %v366_v38 = vpop.f32.mrf.mxu0 }
 0x133   :  { %v367_v40 = vadd.f32 %v366_v38, %v338_v37 }
 0x135   :  { %378 = vst [vmem:[#allocation7] sm:$0xff] %v367_v40 }
 0x13a   :  { %v369_v42 = vpop.f32.mrf.mxu1 }
 0x13b   :  { %v370_v43 = vadd.f32 %v369_v42, %v341_v41 }
 0x13d   :  { %379 = vst [vmem:[#allocation7 + $0x8] sm:$0xff] %v370_v43 }
 0x148   :  { %v372_v48 = vpop.f32.mrf.mxu2 }
 0x149   :  { %v373_v49 = vadd.f32 %v372_v48, %v344_v47 }
 0x14b   :  { %380 = vst [vmem:[#allocation7 + $0x10] sm:$0xff] %v373_v49 }
 0x150   :  { %v375_v51 = vpop.f32.mrf.mxu3 }
 0x151   :  { %v376_v52 = vadd.f32 %v375_v51, %v347_v50 }
 0x153   :  { %381 = vst [vmem:[#allocation7 + $0x18] sm:$0xff] %v376_v52 }
 0x154   :  { %394 = dma.vmem_to_hbm [thread:$0]  %s387_s18, 512, %s389_s4, [#allocation4], %s536_s26, %s536_s26, %s537_s27  }
 0x155   :  { %533 = dma.done.wait [#allocation4], 512  }
 0x156   :  { %534 = vsyncadd [#allocation4], 4294966784 }
 0x157   :  { %399 = vsyncpa [#allocation3], 1 }
 0x158   :  { %400 = vsyncpa [#allocation6], 1 }
 0x159   :  { %401 = vsyncpa [#allocation4], 1 }

</bundles_post_ra>
